<compile_context>
chip_gen: v6e
topology: v6e:2x2x1
jax: 0.10.0
libtpu: 0.0.40
codegen_flags: <defaults>
</compile_context>

<pallas_src>
import math
import functools

import jax
import jax.numpy as jnp
from jax.experimental import pallas as pl
from jax.experimental.pallas import tpu as pltpu


def _round_up(n, m):
    return ((n + m - 1) // m) * m


def _mlp_kernel(x_ref, w1_ref, b1_ref, w2a_ref, w2b_ref, b2_ref, o_ref, *,
                gelu_cols):
    """One (tm, C) row tile of the fused GPT-2 MLP + LoRA forward.

    x:   (tm, C)       input dtype (cast to bf16 in-kernel, on the VPU)
    w1:  (C, Hc+Hr)    bf16 = [W_fc^T | A^T]      (zero-padded, lane aligned)
    b1:  (1, Hc+Hr)    f32  = [b_fc   | 0]
    w2a: (Hc, C)       bf16 = W_proj^T            (zero-padded rows)
    w2b: (Hr, C)       bf16 = (alpha/r) * B^T     (zero-padded rows)
    b2:  (1, C)        f32
    """
    x = x_ref[...].astype(w1_ref.dtype)

    # fused c_fc + LoRA-A matmul, f32 accumulation on the MXU
    h = jnp.dot(x, w1_ref[...], preferred_element_type=jnp.float32) + b1_ref[...]

    # Static, 128-aligned column split: [0, gelu_cols) is the c_fc activation
    # (exact-erf GELU, matching nn.GELU()); [gelu_cols, end) is the LoRA
    # intermediate (+ zero padding) and passes through untouched.  No
    # iota/compare/select mask, no erf on the LoRA/padding columns.
    h_fc = h[:, :gelu_cols]
    h_lo = h[:, gelu_cols:]
    g = 0.5 * h_fc * (1.0 + jax.lax.erf(h_fc * (1.0 / math.sqrt(2.0))))

    # second stage: c_proj on the GELU'd slab + scaled LoRA-B on the small slab
    y = jnp.dot(g.astype(w2a_ref.dtype), w2a_ref[...],
                preferred_element_type=jnp.float32)
    y = y + jnp.dot(h_lo.astype(w2b_ref.dtype), w2b_ref[...],
                    preferred_element_type=jnp.float32)
    y = y + b2_ref[...]

    o_ref[...] = y.astype(o_ref.dtype)


def prepare_mlp_params(w_fc, b_fc, w_proj, b_proj, lora_A, lora_B,
                       lora_r, lora_alpha, *, compute_dtype=jnp.bfloat16):
    """One-time folding of PyTorch-layout weights into the kernel layout.

    Call once per parameter set (NOT per forward): the concat / pad / cast
    here is a full HBM pass over all weights.
      w_fc: (4C, C), b_fc: (4C,), w_proj: (C, 4C), b_proj: (C,),
      lora_A: (r, C), lora_B: (C, r)
    """
    H, C = w_fc.shape                     # H = 4C
    r = lora_A.shape[0]
    scale = float(lora_alpha) / float(lora_r)

    Hc = _round_up(H, 128)                # lane-aligned c_fc width
    Hr = _round_up(max(r, 1), 128)        # lane-aligned LoRA width

    w1 = jnp.zeros((C, Hc + Hr), compute_dtype)
    w1 = w1.at[:, :H].set(w_fc.T.astype(compute_dtype))
    w1 = w1.at[:, Hc:Hc + r].set(lora_A.T.astype(compute_dtype))

    b1 = jnp.zeros((1, Hc + Hr), jnp.float32)
    b1 = b1.at[0, :H].set(b_fc.astype(jnp.float32))

    w2a = jnp.zeros((Hc, C), compute_dtype)
    w2a = w2a.at[:H, :].set(w_proj.T.astype(compute_dtype))

    w2b = jnp.zeros((Hr, C), compute_dtype)
    w2b = w2b.at[:r, :].set((scale * lora_B.T).astype(compute_dtype))

    b2 = b_proj.reshape(1, C).astype(jnp.float32)

    return dict(w1=w1, b1=b1, w2a=w2a, w2b=w2b, b2=b2, gelu_cols=Hc)


def _default_vmem_limit_bytes():
    # ~85% of physical per-TC VMEM: ~54 MiB on v7x, ~108 MiB on v5e/v6e.
    try:
        cap = pltpu.get_tpu_info().vmem_capacity_bytes
        return int(cap * 0.85)
    except Exception:
        return 56 * 1024 * 1024


def _resident_spec(shape):
    """Constant-index (fully resident) block.  Single-buffered: the block
    index never changes, so a second pipeline buffer is pure VMEM waste."""
    index_map = lambda i: (0, 0)
    try:
        return pl.BlockSpec(shape, index_map, pipeline_mode=pl.Buffered(1))
    except Exception:
        return pl.BlockSpec(shape, index_map)


def mlp_pallas(x, params, *, tm=None):
    """x: (B, T, C) -> (B, T, C).  `params` from prepare_mlp_params()."""
    B, T, C = x.shape
    M = B * T
    Hc = params["gelu_cols"]
    Hr = params["w2b"].shape[0]
    Hp = Hc + Hr

    # ---- row tiling --------------------------------------------------------
    if tm is None:
        tm = 512 if M >= 4096 else 256           # big tiles amortize step cost
    tm = max(16, min(tm, _round_up(M, 16)))      # bf16 packs (16, 128) / vreg
    if _round_up(M, tm) // tm < 2 and M >= 32:
        # ensure >= 2 grid steps so both v7x TensorCores get work
        tm = _round_up(-(-M // 2), 16)
    M_pad = _round_up(M, tm)

    x2 = x.reshape(M, C)
    if M_pad != M:
        x2 = jnp.pad(x2, ((0, M_pad - M), (0, 0)))
    # x stays in its original dtype; the bf16 cast happens per-tile in-kernel.

    kernel = functools.partial(_mlp_kernel, gelu_cols=Hc)

    cost = pl.CostEstimate(
        flops=4 * M_pad * C * Hp,
        transcendentals=M_pad * Hc,
        bytes_accessed=(x2.size * x2.dtype.itemsize
                        + params["w1"].size * params["w1"].dtype.itemsize
                        + params["w2a"].size * params["w2a"].dtype.itemsize
                        + params["w2b"].size * params["w2b"].dtype.itemsize
                        + (Hp + C) * 4
                        + M_pad * C * x.dtype.itemsize),
    )

    out2 = pl.pallas_call(
        kernel,
        out_shape=jax.ShapeDtypeStruct((M_pad, C), x.dtype),
        grid_spec=pltpu.PrefetchScalarGridSpec(
            num_scalar_prefetch=0,
            grid=(M_pad // tm,),
            in_specs=[
                pl.BlockSpec((tm, C), lambda i: (i, 0)),   # x row tile
                _resident_spec((C, Hp)),                   # [W_fc^T | A^T]
                _resident_spec((1, Hp)),                   # [b_fc | 0]
                _resident_spec((Hc, C)),                   # W_proj^T
                _resident_spec((Hr, C)),                   # (alpha/r) * B^T
                _resident_spec((1, C)),                    # b_proj
            ],
            out_specs=pl.BlockSpec((tm, C), lambda i: (i, 0)),
        ),
        compiler_params=pltpu.CompilerParams(
            dimension_semantics=("parallel",),
            vmem_limit_bytes=_default_vmem_limit_bytes(),
        ),
        cost_estimate=cost,
    )(x2, params["w1"], params["b1"], params["w2a"], params["w2b"], params["b2"])

    # TODO(synk): for GPT-2-XL-class widths on v7x (C >= ~1600) switch to a
    # second grid axis over the hidden dim (stream W1/W2 slabs with an f32
    # accumulator scratch) instead of fully-resident weights.

    return out2[:M].reshape(B, T, C)


def mlp_reference(x, w_fc, b_fc, w_proj, b_proj, lora_A, lora_B, lora_r, lora_alpha):
    scale = float(lora_alpha) / float(lora_r)
    y = (x @ lora_A.T) @ lora_B.T * scale
    h = x @ w_fc.T + b_fc
    h = 0.5 * h * (1.0 + jax.lax.erf(h / jnp.sqrt(2.0)))
    return h @ w_proj.T + b_proj + y


if __name__ == "__main__":
    # small GPT-2-ish config
    batch, seq, n_embd = 2, 8, 32
    hidden = 4 * n_embd                # 128
    lora_r, lora_a = 8, 16

    key = jax.random.PRNGKey(0)
    k = jax.random.split(key, 7)
    x = jax.random.normal(k[0], (batch, seq, n_embd), jnp.float32)

    # deterministic parameter init (shapes follow nn.Linear / LoRA defs)
    w_fc   = jax.random.normal(k[1], (hidden, n_embd), jnp.float32) * 0.02
    b_fc   = jax.random.normal(k[2], (hidden,), jnp.float32) * 0.02
    w_proj = jax.random.normal(k[3], (n_embd, hidden), jnp.float32) * 0.02
    b_proj = jax.random.normal(k[4], (n_embd,), jnp.float32) * 0.02
    lora_A = jax.random.normal(k[5], (lora_r, n_embd), jnp.float32) * 0.02
    lora_B = jax.random.normal(k[6], (n_embd, lora_r), jnp.float32) * 0.02
    # NOTE: real LoRA initializes B to zeros; kept non-zero so the fused LoRA
    # path in the kernel is actually exercised.

    params = prepare_mlp_params(w_fc, b_fc, w_proj, b_proj,
                                lora_A, lora_B, lora_r, lora_a)

    out = mlp_pallas(x, params)
    out = jax.block_until_ready(out)

    ref = mlp_reference(x, w_fc, b_fc, w_proj, b_proj,
                        lora_A, lora_B, lora_r, lora_a)
    assert out.shape == (batch, seq, n_embd)
    # bf16 matmul operands vs. f32 reference -> loosened tolerance
    assert jnp.allclose(out, ref, atol=1e-2, rtol=1e-2), "mismatch vs reference"
    print("KERNEL_OK")
</pallas_src>

<mosaic_0001>
module attributes {stable_mosaic.version = 11 : i64} {
  func.func @_mlp_kernel(%arg0: i32, %arg1: memref<16x32xf32, #tpu.memory_space<vmem>>, %arg2: memref<32x256xbf16, #tpu.memory_space<vmem>>, %arg3: memref<1x256xf32, #tpu.memory_space<vmem>>, %arg4: memref<128x32xbf16, #tpu.memory_space<vmem>>, %arg5: memref<128x32xbf16, #tpu.memory_space<vmem>>, %arg6: memref<1x32xf32, #tpu.memory_space<vmem>>, %arg7: memref<16x32xf32, #tpu.memory_space<vmem>>) attributes {dimension_semantics = [#tpu.dimension_semantics<parallel>], iteration_bounds = array<i64: 1>, scalar_prefetch = 0 : i64, scratch_operands = 0 : i64, tpu.core_type = #tpu.core_type<tc>, window_params = [{transform_indices = @transform_0, window_bounds = array<i64: 16, 32>}, {pipeline_mode = #tpu.pipeline_mode<synchronous>, transform_indices = @transform_1, window_bounds = array<i64: 32, 256>}, {pipeline_mode = #tpu.pipeline_mode<synchronous>, transform_indices = @transform_2, window_bounds = array<i64: 1, 256>}, {pipeline_mode = #tpu.pipeline_mode<synchronous>, transform_indices = @transform_3, window_bounds = array<i64: 128, 32>}, {pipeline_mode = #tpu.pipeline_mode<synchronous>, transform_indices = @transform_4, window_bounds = array<i64: 128, 32>}, {pipeline_mode = #tpu.pipeline_mode<synchronous>, transform_indices = @transform_5, window_bounds = array<i64: 1, 32>}, {transform_indices = @transform_6, window_bounds = array<i64: 16, 32>}]} {
    %c0 = arith.constant 0 : index
    %c0_0 = arith.constant 0 : index
    %0 = vector.load %arg1[%c0, %c0_0] : memref<16x32xf32, #tpu.memory_space<vmem>>, vector<16x32xf32>
    %1 = arith.truncf %0 : vector<16x32xf32> to vector<16x32xbf16>
    %c0_1 = arith.constant 0 : index
    %c0_2 = arith.constant 0 : index
    %2 = vector.load %arg2[%c0_1, %c0_2] : memref<32x256xbf16, #tpu.memory_space<vmem>>, vector<32x256xbf16>
    %cst = arith.constant dense<0.000000e+00> : vector<16x256xf32>
    %3 = tpu.matmul %1, %2, %cst {dimension_numbers = #tpu.dot_dimension_numbers<[1], [0], [0], [1], [0, 0, 1, 1], [], []>} : vector<16x32xbf16>, vector<32x256xbf16>, vector<16x256xf32> -> vector<16x256xf32>
    %c0_3 = arith.constant 0 : index
    %c0_4 = arith.constant 0 : index
    %4 = vector.load %arg3[%c0_3, %c0_4] : memref<1x256xf32, #tpu.memory_space<vmem>>, vector<1x256xf32>
    %5 = vector.broadcast %4 : vector<1x256xf32> to vector<16x256xf32>
    %6 = arith.addf %3, %5 : vector<16x256xf32>
    %7 = vector.extract_strided_slice %6 {offsets = [0, 0], sizes = [16, 128], strides = [1, 1]} : vector<16x256xf32> to vector<16x128xf32>
    %8 = vector.extract_strided_slice %6 {offsets = [0, 128], sizes = [16, 128], strides = [1, 1]} : vector<16x256xf32> to vector<16x128xf32>
    %cst_5 = arith.constant 5.000000e-01 : f32
    %9 = vector.broadcast %cst_5 : f32 to vector<16x128xf32>
    %10 = arith.mulf %9, %7 : vector<16x128xf32>
    %cst_6 = arith.constant 0.707106769 : f32
    %11 = vector.broadcast %cst_6 : f32 to vector<16x128xf32>
    %12 = arith.mulf %7, %11 : vector<16x128xf32>
    %13 = math.erf %12 : vector<16x128xf32>
    %cst_7 = arith.constant 1.000000e+00 : f32
    %14 = vector.broadcast %cst_7 : f32 to vector<16x128xf32>
    %15 = arith.addf %14, %13 : vector<16x128xf32>
    %16 = arith.mulf %10, %15 : vector<16x128xf32>
    %17 = arith.truncf %16 : vector<16x128xf32> to vector<16x128xbf16>
    %c0_8 = arith.constant 0 : index
    %c0_9 = arith.constant 0 : index
    %18 = vector.load %arg4[%c0_8, %c0_9] : memref<128x32xbf16, #tpu.memory_space<vmem>>, vector<128x32xbf16>
    %cst_10 = arith.constant dense<0.000000e+00> : vector<16x32xf32>
    %19 = tpu.matmul %17, %18, %cst_10 {dimension_numbers = #tpu.dot_dimension_numbers<[1], [0], [0], [1], [0, 0, 1, 1], [], []>} : vector<16x128xbf16>, vector<128x32xbf16>, vector<16x32xf32> -> vector<16x32xf32>
    %20 = arith.truncf %8 : vector<16x128xf32> to vector<16x128xbf16>
    %c0_11 = arith.constant 0 : index
    %c0_12 = arith.constant 0 : index
    %21 = vector.load %arg5[%c0_11, %c0_12] : memref<128x32xbf16, #tpu.memory_space<vmem>>, vector<128x32xbf16>
    %cst_13 = arith.constant dense<0.000000e+00> : vector<16x32xf32>
    %22 = tpu.matmul %20, %21, %cst_13 {dimension_numbers = #tpu.dot_dimension_numbers<[1], [0], [0], [1], [0, 0, 1, 1], [], []>} : vector<16x128xbf16>, vector<128x32xbf16>, vector<16x32xf32> -> vector<16x32xf32>
    %23 = arith.addf %19, %22 : vector<16x32xf32>
    %c0_14 = arith.constant 0 : index
    %c0_15 = arith.constant 0 : index
    %24 = vector.load %arg6[%c0_14, %c0_15] : memref<1x32xf32, #tpu.memory_space<vmem>>, vector<1x32xf32>
    %25 = vector.broadcast %24 : vector<1x32xf32> to vector<16x32xf32>
    %26 = arith.addf %23, %25 : vector<16x32xf32>
    %c0_16 = arith.constant 0 : index
    %c0_17 = arith.constant 0 : index
    %27 = vector.load %arg7[%c0_16, %c0_17] : memref<16x32xf32, #tpu.memory_space<vmem>>, vector<16x32xf32>
    tpu.vector_store %arg7[%c0_16, %c0_17], %26 {strides = array<i32>} : memref<16x32xf32, #tpu.memory_space<vmem>>, vector<16x32xf32>,
    return
  }
  func.func @transform_0(%arg0: i32) -> (i32, i32) {
    %c0_i32 = arith.constant 0 : i32
    %c0_i32_0 = arith.constant 0 : i32
    return %arg0, %c0_i32 : i32, i32
  }
  func.func @transform_1(%arg0: i32) -> (i32, i32) {
    %c0_i32 = arith.constant 0 : i32
    %c0_i32_0 = arith.constant 0 : i32
    %c0_i32_1 = arith.constant 0 : i32
    return %c0_i32, %c0_i32_0 : i32, i32
  }
  func.func @transform_2(%arg0: i32) -> (i32, i32) {
    %c0_i32 = arith.constant 0 : i32
    %c0_i32_0 = arith.constant 0 : i32
    %c0_i32_1 = arith.constant 0 : i32
    return %c0_i32, %c0_i32_0 : i32, i32
  }
  func.func @transform_3(%arg0: i32) -> (i32, i32) {
    %c0_i32 = arith.constant 0 : i32
    %c0_i32_0 = arith.constant 0 : i32
    %c0_i32_1 = arith.constant 0 : i32
    return %c0_i32, %c0_i32_0 : i32, i32
  }
  func.func @transform_4(%arg0: i32) -> (i32, i32) {
    %c0_i32 = arith.constant 0 : i32
    %c0_i32_0 = arith.constant 0 : i32
    %c0_i32_1 = arith.constant 0 : i32
    return %c0_i32, %c0_i32_0 : i32, i32
  }
  func.func @transform_5(%arg0: i32) -> (i32, i32) {
    %c0_i32 = arith.constant 0 : i32
    %c0_i32_0 = arith.constant 0 : i32
    %c0_i32_1 = arith.constant 0 : i32
    return %c0_i32, %c0_i32_0 : i32, i32
  }
  func.func @transform_6(%arg0: i32) -> (i32, i32) {
    %c0_i32 = arith.constant 0 : i32
    %c0_i32_0 = arith.constant 0 : i32
    return %arg0, %c0_i32 : i32, i32
  }
}

</mosaic_0001>

<bundles_post_ra>
// kernel: tpu_custom_call.1
= control target key start
LH: loop header
LB: loop body
LE: loop exit
PB: predicated region body
PF: predicated region fallthrough
CT: control target
= control target key end

     0   :  { %v494_v2 = vmov 0   ;;  %v495_v6 = vmov 0.0   ;;  %vm64_vm0 = vcmask 261120   ;;  %s613_s0 = inlined_call_operand.vmem [shape: f32[16,32], index: 0, kind: input, shape index: {}]   ;;  %s614_s1 = inlined_call_operand.vmem [shape: bf16[32,256], index: 1, kind: input, shape index: {}]   ;;  %s615_s2 = inlined_call_operand.vmem [shape: f32[1,256], index: 2, kind: input, shape index: {}]   ;;  %s616_s3 = inlined_call_operand.vmem [shape: bf16[128,32], index: 3, kind: input, shape index: {}]   ;;  %s617_s4 = inlined_call_operand.vmem [shape: bf16[128,32], index: 4, kind: input, shape index: {}]   ;;  %s618_s5 = inlined_call_operand.vmem [shape: f32[1,32], index: 5, kind: input, shape index: {}]   ;;  %s619_s6 = inlined_call_operand.hbm [shape: f32[16,32], index: 6, kind: output, shape index: {}]  }
   0x1   :  { %v446_v0 = vld [vmem:[%s614_s1 + $0x14] ss:$8 sps:$4 sm:$0xff]   ;;  %v448_v1 = vld [vmem:[%s614_s1 + $0x10] ss:$8 sps:$4 sm:$0xff]   ;;  %100 = vmatprep.mubr.bf16.mxu0 %v494_v2  ;;  %v449_v3 = vld [vmem:[%s614_s1 + $0x4] ss:$8 sps:$4 sm:$0xff]   ;;  %400 = vmatprep.subr.bf16.mxu1 %v495_v6 }
   0x2   :  { %80 = vmatprep.subr.bf16.mxu0 %v446_v0  ;;  %v451_v4 = vld [vmem:[%s614_s1] ss:$8 sps:$4 sm:$0xff]   ;;  %v452_v8 = vld [vmem:[%s617_s4 + $0x38] sm:$0xff]   ;;  %v453_v10 = vld [vmem:[%s617_s4 + $0x30] sm:$0xff]  }
   0x3   :  { %v25_v5 = vld [vmem:[%s613_s0] sm:$0xff]  ;;  %81 = vmatpush1.bf16.msra.mxu0 %v448_v1  ;;  %v26_v7 = vld [vmem:[%s613_s0 + $0x8] sm:$0xff]  ;;  %401 = vmatpush3.bf16.msra.mxu1 %v452_v8  ;;  %v457_v12 = vld [vmem:[%s616_s3 + $0x38] sm:$0xff]  }
   0x4   :  { %82 = vmatprep.subr.bf16.mxu0 %v449_v3  ;;  %v27_v9 = vpack.c.bf16 %v26_v7, %v25_v5  ;;  %402 = vmatprep.subr.bf16.mxu1 %v495_v6  ;;  %v454_v11 = vld [vmem:[%s617_s4 + $0x28] sm:$0xff]   ;;  %v455_v13 = vld [vmem:[%s617_s4 + $0x20] sm:$0xff]  }
   0x7   :  { %83 = vmatpush1.bf16.msra.mxu0 %v451_v4  ;;  %403 = vmatpush3.bf16.msra.mxu1 %v453_v10 }
   0x8   :  { %420 = vmatprep.subr.bf16.mxu0 %v495_v6  ;;  %404 = vmatprep.subr.bf16.mxu1 %v495_v6 }
   0xa   :  { %364 = vmatmul.mubr.msk.bf16.vlgmr.msra.gmra.mxu0 %vm64_vm0, %v27_v9 }
   0xb   :  { %421 = vmatpush3.bf16.msra.mxu0 %v457_v12  ;;  %405 = vmatpush3.bf16.msra.mxu1 %v454_v11 }
   0xc   :  { %422 = vmatprep.subr.bf16.mxu0 %v495_v6  ;;  %406 = vmatprep.subr.bf16.mxu1 %v495_v6 }
   0xd   :  { %11 = vsyncpa [#allocation3], 0  ;;  %v456_v14 = vld [vmem:[%s617_s4 + $0x18] sm:$0xff]   ;;  %v458_v15 = vld [vmem:[%s617_s4 + $0x10] sm:$0xff]   ;;  %vm496_vm1 = vmmov 0   ;;  %v34_v25 = vlaneseq  ;;  %s497_s14 = smov [#allocation2]  }
   0xe   :  { %v459_v16 = vld [vmem:[%s616_s3 + $0x30] sm:$0xff]   ;;  %v460_v17 = vld [vmem:[%s617_s4 + $0x8] sm:$0xff]   ;;  %v462_v19 = vld [vmem:[%s617_s4] sm:$0xff]   ;;  %416 = vmatprep.mubr.msk.bf16.mxu1 %vm496_vm1, %v495_v6  ;;  %436 = vmatprep.mubr.msk.bf16.mxu0 %vm496_vm1, %v495_v6  ;;  %s349_s15 = sshll.u32 %s497_s14, 4  ;;  %s350_s15 = int_to_ptr.vmem [resolvable:$true] %s349_s15 }
   0xf   :  { %407 = vmatpush3.bf16.msra.mxu1 %v455_v13  ;;  %423 = vmatpush3.bf16.msra.mxu0 %v459_v16  ;;  %v461_v18 = vld [vmem:[%s616_s3 + $0x28] sm:$0xff]   ;;  %v463_v20 = vld [vmem:[%s616_s3 + $0x20] sm:$0xff]   ;;  %v464_v21 = vld [vmem:[%s616_s3 + $0x18] sm:$0xff]   ;;  %v35_v26 = vshrl.u32 %v34_v25, 7  ;;  %s472_s16 = scalar_lea.vmem %s350_s15, 256  ;;  %p477_p1 = scmp.lt.s32.totalorder %s350_s15, %s350_s15 }
  0x10   :  { %408 = vmatprep.subr.bf16.mxu1 %v495_v6  ;;  %424 = vmatprep.subr.bf16.mxu0 %v495_v6  ;;  %v465_v22 = vld [vmem:[%s616_s3 + $0x10] sm:$0xff]   ;;  %v466_v23 = vld [vmem:[%s616_s3 + $0x8] sm:$0xff]   ;;  %v467_v24 = vld [vmem:[%s616_s3] sm:$0xff]   ;;  %p473_p0 = scmp.ne.s32.totalorder %s350_s15, %s472_s16  ;;  %p478_p2 = scmp.lt.s32.totalorder %s472_s16, %s472_s16 }
  0x11   :  { %v36_v27 = vsub.s32 0, %v35_v26  ;;  %v32_v28 = vld [vmem:[%s615_s2] sm:$0x3]  ;;  %v40_v30 = vsub.s32 1, %v35_v26 }
  0x12   :  { %v381_v57 = vld [vmem:[%s618_s5] ss:$0 sm:$0xff]  ;;  %p479_p3 = por %p478_p2, %p477_p1 }
  0x13   :  { %409 = vmatpush3.bf16.msra.mxu1 %v456_v14  ;;  %425 = vmatpush3.bf16.msra.mxu0 %v461_v18  ;;  %v37_v29 = vrot.slane %v32_v28, %v36_v27  ;;  %v41_v35 = vrot.slane %v32_v28, %v40_v30 }
  0x14   :  { %410 = vmatprep.subr.bf16.mxu1 %v495_v6  ;;  %426 = vmatprep.subr.bf16.mxu0 %v495_v6  ;;  %p480_p4 = pnand %p479_p3, %p473_p0 }
  0x17   :  { %411 = vmatpush3.bf16.msra.mxu1 %v458_v15  ;;  %427 = vmatpush3.bf16.msra.mxu0 %v463_v20 }
  0x18   :  { %412 = vmatprep.subr.bf16.mxu1 %v495_v6  ;;  %428 = vmatprep.subr.bf16.mxu0 %v495_v6 }
  0x1b   :  { %413 = vmatpush3.bf16.msra.mxu1 %v460_v17  ;;  %429 = vmatpush3.bf16.msra.mxu0 %v464_v21 }
  0x1c   :  { %414 = vmatprep.subr.bf16.mxu1 %v495_v6  ;;  %430 = vmatprep.subr.bf16.mxu0 %v495_v6 }
  0x1f   :  { %415 = vmatpush3.bf16.msra.mxu1 %v462_v19  ;;  %431 = vmatpush3.bf16.msra.mxu0 %v465_v22 }
  0x20   :  { %432 = vmatprep.subr.bf16.mxu0 %v495_v6 }
  0x23   :  { %433 = vmatpush3.bf16.msra.mxu0 %v466_v23 }
  0x24   :  { %434 = vmatprep.subr.bf16.mxu0 %v495_v6 }
  0x27   :  { %435 = vmatpush3.bf16.msra.mxu0 %v467_v24 }
  0xca   :  { %v102_v31 = vpop.f32.mrf.mxu0 }
  0xcb   :  { %v103_v32 = vadd.f32 %v102_v31, %v37_v29 }
  0xcc   :  { %v104_v33 = vpop.f32.mrf.mxu0 }
  0xcd   :  { %v113_v34 = vmul.f32 0.70710677, %v103_v32  ;;  %v105_v39 = vadd.f32 %v104_v33, %v41_v35  ;;  %v111_v46 = vmul.f32 0.5, %v103_v32 }
  0xce   :  { %v106_v36 = vpop.f32.mrf.mxu0 }
  0xcf   :  { %468 = verf.f32 %v113_v34  ;;  %v107_v37 = vadd.f32 %v106_v36, %v37_v29 }
  0xd0   :  { %v108_v38 = vpop.f32.mrf.mxu0 }
  0xd1   :  { %v114_v40 = vmul.f32 0.70710677, %v107_v37  ;;  %v109_v41 = vadd.f32 %v108_v38, %v41_v35  ;;  %v112_v47 = vmul.f32 0.5, %v107_v37 }
  0xd3   :  { %470 = verf.f32 %v114_v40  ;;  %v138_v42 = vpack.c.bf16 %v109_v41, %v105_v39 }
  0xd5   :  { %417 = vmatmul.mubr.bf16.vlgmr.msra.gmra.mxu1 %v138_v42 }
  0xdc   :  { %v469_v43 = vpop.eup %468 }
  0xdd   :  { %v117_v44 = vadd.f32 1.0, %v469_v43 }
  0xdf   :  { %v119_v49 = vmul.f32 %v117_v44, %v111_v46 }
  0xe0   :  { %v471_v45 = vpop.eup %470 }
  0xe1   :  { %v118_v48 = vadd.f32 1.0, %v471_v45 }
  0xe3   :  { %v120_v50 = vmul.f32 %v118_v48, %v112_v47 }
  0xe5   :  { %v121_v51 = vpack.c.bf16 %v120_v50, %v119_v49 }
  0xe7   :  { %437 = vmatmul.mubr.bf16.vlgmr.msra.gmra.mxu0 %v121_v51 }
 0x195   :  { %v237_v52 = vpop.f32.mrf.mxu1 }
 0x197   :  { %v418_v53 = vpop.f32.mrf.mxu1 }
 0x199   :  { %v240_v54 = vpop.f32.mrf.mxu1 }
 0x19b   :  { %v419_v55 = vpop.f32.mrf.mxu1 }
 0x1a7   :  { %v326_v56 = vpop.f32.mrf.mxu0 }
 0x1a8   :  { %v327_v58 = vadd.f32 %v326_v56, %v237_v52 }
 0x1a9   :  { %v438_v59 = vpop.f32.mrf.mxu0 }
 0x1aa   :  { %v340_v60 = vadd.f32 %v381_v57, %v327_v58 }
 0x1ab   :  { %v329_v61 = vpop.f32.mrf.mxu0 }
 0x1ac   :  { %342 = vst.msk [vmem:[#allocation2] sm:$0xff] %vm64_vm0, %v340_v60  ;;  %v330_v62 = vadd.f32 %v329_v61, %v240_v54 }
 0x1ad   :  { %v439_v63 = vpop.f32.mrf.mxu0 }
 0x1ae   :  { %v341_v0 = vadd.f32 %v381_v57, %v330_v62 }
 0x1b0   :  { %343 = vst.msk [vmem:[#allocation2 + $0x8] sm:$0xff] %vm64_vm0, %v341_v0 }
 0x1b1   :  { %483 = shalt.err (!%p480_p4)
}
 0x1b2   :  { %s498_s5 = smov 128   ;;  %s499_s17 = smov 8  }
 0x1b3   :  { %355 = dma.vmem_to_hbm [thread:$0]  %s350_s15, 256, %s619_s6, [#allocation3], %s498_s5, %s498_s5, %s499_s17  }
 0x1b4   :  { %492 = dma.done.wait [#allocation3], 256  }
 0x1b5   :  { %493 = vsyncadd [#allocation3], 4294967040 }
 0x1b6   :  { %359 = vsyncpa [#allocation3], 1 }

</bundles_post_ra>
